<compile_context>
chip_gen: v6e
topology: v6e:2x2x1
jax: 0.10.0
libtpu: 0.0.40
codegen_flags: <defaults>
</compile_context>

<pallas_src>
import functools

import jax
import jax.numpy as jnp
from jax import lax
from jax.experimental import pallas as pl
from jax.experimental.pallas import tpu as pltpu

T_CONST = 0.1


# ---------------------------------------------------------------------------
# Pallas kernel: one grid step == `ts` RNN timesteps for one batch block.
# ---------------------------------------------------------------------------
def _rnn_chunk_kernel(hn0_ref, drive_ref, w_ref, rnn_out_ref, hn_last_ref,
                      *, ts, seq_len, leak, ragged):
    t = pl.program_id(1)            # time-chunk index (sequential axis)

    @pl.when(t == 0)
    def _():
        hn_last_ref[...] = hn0_ref[...]

    w = w_ref[...]                  # (4H, 4H) = T * W_rec^T  (f32 or bf16)
    # TODO(synk): verify in the bundle dump that Mosaic hoists the RHS weight
    # push across the unrolled matmuls; if not, drive the MXU explicitly via
    # pltpu.matmul_push_rhs / matmul_acc_lhs / matmul_pop once per chunk.

    def body(i, hn):                # hn: (bb, 4H) f32 carry on the serial path
        pre = jnp.dot(hn.astype(w.dtype), w,
                      preferred_element_type=jnp.float32)
        # leak stays in f32 on the VPU (free slot under the MXU-latency-bound
        # recurrence); drive already contains T*(x@W_in)*str_mask + bias.
        hn_new = jnp.maximum(leak * hn + pre + drive_ref[i].astype(jnp.float32),
                             0.0)
        rnn_out_ref[i] = hn_new.astype(rnn_out_ref.dtype)
        if ragged:
            # Padded steps only exist in the last chunk: snapshot the true
            # final state once, instead of a per-step where on the carry.
            @pl.when(t * ts + i == seq_len - 1)
            def _():
                hn_last_ref[...] = hn_new
        return hn_new

    hn_final = lax.fori_loop(0, ts, body, hn_last_ref[...], unroll=True)

    if ragged:
        # Inter-chunk carry only; the last chunk's true final state was
        # snapshotted above and must not be overwritten by padded-step
        # evolution.
        @pl.when(t < pl.num_programs(1) - 1)
        def _():
            hn_last_ref[...] = hn_final
    else:
        hn_last_ref[...] = hn_final


# ---------------------------------------------------------------------------
# Parameter construction (deterministic, synthetic — mirrors __init__ shapes).
# ---------------------------------------------------------------------------
def init_params(key, inp_dim, hid_dim, action_dim):
    names = ["str2str", "str2thal", "m12m1", "m12str", "thal2m1",
             "m12thal", "thal2str", "str2stn", "stn2thal"]
    keys = jax.random.split(key, len(names) + 8)
    p = {}
    for i, n in enumerate(names):
        p[n] = jax.random.uniform(keys[i], (hid_dim, hid_dim),
                                  jnp.float32, 0.0, 0.01)
    k = len(names)
    p["bias"] = jax.random.uniform(keys[k + 0], (1, 4 * hid_dim),
                                   jnp.float32, 0.0, 0.01)
    p["inp_weight"] = jax.random.uniform(keys[k + 1], (inp_dim, 4 * hid_dim),
                                         jnp.float32, 0.0, 0.1)
    # str2str_fixed: uniform(0, 0.01) with ~85% sparsity (emulates nn.init.sparse_).
    dense = jax.random.uniform(keys[k + 2], (hid_dim, hid_dim),
                               jnp.float32, 0.0, 0.01)
    keep = jax.random.bernoulli(keys[k + 3], 0.15, (hid_dim, hid_dim))
    p["str2str_fixed"] = dense * keep.astype(jnp.float32)
    # mean / std linear heads (torch nn.Linear: weight (A, 4H), bias (A,))
    lim = 1.0 / jnp.sqrt(4.0 * hid_dim)
    p["mean_w"] = jax.random.uniform(keys[k + 4], (action_dim, 4 * hid_dim),
                                     jnp.float32, -lim, lim)
    p["mean_b"] = jax.random.uniform(keys[k + 5], (action_dim,),
                                     jnp.float32, -lim, lim)
    p["std_w"] = jax.random.uniform(keys[k + 6], (action_dim, 4 * hid_dim),
                                    jnp.float32, -lim, lim)
    p["std_b"] = jax.random.uniform(keys[k + 7], (action_dim,),
                                    jnp.float32, -lim, lim)
    return p


def build_effective_weights(p, hid_dim):
    """Compose the block recurrent matrix / masks exactly as in forward()."""
    H = hid_dim
    ht = lambda w: jnp.clip(w, 1e-10, 1.0)          # F.hardtanh(., 1e-10, 1)
    eye = jnp.eye(H, dtype=jnp.float32)
    zeros = jnp.zeros((H, H), jnp.float32)
    n_inh = int(0.3 * H)

    str2str_mask = jnp.zeros((H, H), jnp.float32)
    str2str_D = -eye
    m12m1_D = jnp.diag(jnp.concatenate(
        [jnp.ones(H - n_inh, jnp.float32), -jnp.ones(n_inh, jnp.float32)]))
    m12str_mask = jnp.concatenate(
        [jnp.ones((H, H - n_inh), jnp.float32),
         jnp.zeros((H, n_inh), jnp.float32)], axis=1)
    str2stn_mask = jnp.concatenate(
        [jnp.zeros((H, H // 2), jnp.float32),
         jnp.ones((H, H // 2), jnp.float32)], axis=1)
    str2thal_mask = jnp.concatenate(
        [jnp.ones((H, H // 2), jnp.float32),
         jnp.zeros((H, H // 2), jnp.float32)], axis=1)
    stn2thal_D = -eye

    str2str_rec = (str2str_mask * ht(p["str2str"]) + p["str2str_fixed"]) @ str2str_D
    m12m1_rec = ht(p["m12m1"]) @ m12m1_D
    m12str_rec = m12str_mask * ht(p["m12str"])
    str2thal_rec = str2thal_mask * ht(p["str2thal"])
    thal2m1_rec = ht(p["thal2m1"])
    m12thal_rec = ht(p["m12thal"])
    thal2str_rec = ht(p["thal2str"])
    str2stn_rec = str2stn_mask * ht(p["str2stn"])
    stn2thal_rec = ht(p["stn2thal"]) @ stn2thal_D

    W_str = jnp.concatenate([str2str_rec, zeros, thal2str_rec, m12str_rec], axis=1)
    W_stn = jnp.concatenate([str2stn_rec, zeros, zeros, zeros], axis=1)
    W_thal = jnp.concatenate([str2thal_rec, stn2thal_rec, zeros, m12thal_rec], axis=1)
    W_m1 = jnp.concatenate([zeros, zeros, thal2m1_rec, m12m1_rec], axis=1)
    W_rec = jnp.concatenate([W_str, W_stn, W_thal, W_m1], axis=0)   # (4H, 4H)

    inp_w = ht(p["inp_weight"])                                     # (inp_dim, 4H)
    bias = ht(p["bias"])                                            # (1, 4H)
    str_mask = 0.3 * jnp.concatenate(
        [jnp.ones(H, jnp.float32), jnp.zeros(3 * H, jnp.float32)])[None]
    m1_mask = jnp.concatenate(
        [jnp.zeros(3 * H, jnp.float32), jnp.ones(H, jnp.float32)])[None]
    return W_rec.T, inp_w, bias, str_mask, m1_mask


def _num_tensorcores():
    """Best-effort TensorCore-per-chip count (2 on v7x, 1 on v5e/v6e)."""
    try:
        info = pltpu.get_tpu_info()
        for name in ("num_cores", "core_count", "tensorcore_count",
                     "num_tensorcores"):
            v = getattr(info, name, None)
            if isinstance(v, int) and v > 0:
                return v
    except Exception:
        pass
    try:
        if "v7" in jax.devices()[0].device_kind.lower():
            return 2
    except Exception:
        pass
    return 1


# ---------------------------------------------------------------------------
# Wrapper: folds weights, precomputes drive (+bias), calls pallas_call, then
# applies the mean/std heads on the time-major output.
# ---------------------------------------------------------------------------
@functools.partial(jax.jit,
                   static_argnames=("hid_dim", "time_chunk", "batch_block",
                                    "weight_dtype", "drive_dtype", "out_dtype"))
def rnn_multiregional_forward(inp, hn, params, hid_dim, *, time_chunk=32,
                              batch_block=None,
                              weight_dtype=jnp.bfloat16,
                              drive_dtype=jnp.bfloat16,
                              out_dtype=jnp.float32):
    B, S, _ = inp.shape
    H4 = 4 * hid_dim

    wrec_t, inp_w, bias, str_mask, m1_mask = build_effective_weights(params, hid_dim)

    # MXU operand: only T*W_rec^T; the (1-T) leak stays in f32 on the VPU.
    w_eff = (T_CONST * wrec_t).astype(weight_dtype)
    # Per-step drive with the bias folded in: drive_t = T*(x_t @ W_in)*str_mask + bias.
    w_in_eff = T_CONST * inp_w * str_mask                    # (inp_dim, 4H)

    # --- static tiling decisions -------------------------------------------
    num_cores = _num_tensorcores()
    b_pad = pl.cdiv(B, 8) * 8                                # sublane-align batch
    if batch_block is not None:
        bb = batch_block
    else:
        # vreg-pressure cap: keep the f32 carry (bb x 4H) within ~32 vregs.
        cap = max(8, ((32 * 1024) // max(H4, 1)) // 8 * 8)
        bb = min(b_pad, 256, cap)
        if num_cores >= 2 and b_pad >= 16:
            # give every TensorCore at least one batch block (v7x megacore)
            bb = min(bb, max(8, (b_pad // (num_cores * 8)) * 8))
    bb = max(8, min((bb // 8) * 8, b_pad))
    b_pad = pl.cdiv(b_pad, bb) * bb

    drive_bytes = jnp.dtype(drive_dtype).itemsize
    out_bytes = jnp.dtype(out_dtype).itemsize
    w_bytes = jnp.dtype(weight_dtype).itemsize

    ts = max(1, min(time_chunk, S))                          # timesteps / grid step
    # VMEM-adaptive chunk: double-buffered drive + rnn_out blocks under ~24 MiB
    # (safe on v7x's 64 MiB per-TC VMEM as well as v5e/v6e's 128 MiB).
    while ts > 1 and 2 * ts * bb * H4 * (drive_bytes + out_bytes) > (24 << 20):
        ts = max(1, ts // 2)
    s_pad = pl.cdiv(S, ts) * ts
    nb, nt = b_pad // bb, s_pad // ts
    ragged = (s_pad != S)

    vmem_need = (2 * ts * bb * H4 * (drive_bytes + out_bytes)   # drive + rnn_out (x2 buf)
                 + 2 * H4 * H4 * w_bytes                        # W (x2 buf)
                 + 4 * bb * H4 * 4)                             # hn0 + hn_last (x2 buf)
    vmem_limit = int(min(56 << 20, max(vmem_need + (8 << 20), 32 << 20)))

    # --- precompute drive for all timesteps (pad x BEFORE the einsum) -------
    x = jnp.pad(inp.astype(jnp.float32),
                ((0, b_pad - B), (0, s_pad - S), (0, 0)))
    drive = (jnp.einsum('bsi,ij->sbj', x, w_in_eff) + bias).astype(drive_dtype)
    hn0 = jnp.pad(hn[0].astype(jnp.float32), ((0, b_pad - B), (0, 0)))

    kernel = functools.partial(_rnn_chunk_kernel, ts=ts, seq_len=S,
                               leak=1.0 - T_CONST, ragged=ragged)

    rnn_tm, hn_last_p = pl.pallas_call(
        kernel,
        out_shape=(jax.ShapeDtypeStruct((s_pad, b_pad, H4), out_dtype),
                   jax.ShapeDtypeStruct((b_pad, H4), jnp.float32)),
        grid=(nb, nt),
        in_specs=[
            pl.BlockSpec((bb, H4), lambda b, t: (b, 0)),          # hn0
            pl.BlockSpec((ts, bb, H4), lambda b, t: (t, b, 0)),   # drive (time-major)
            pl.BlockSpec((H4, H4), lambda b, t: (0, 0)),          # T * W_rec^T
        ],
        out_specs=(
            pl.BlockSpec((ts, bb, H4), lambda b, t: (t, b, 0)),   # rnn_out chunk
            pl.BlockSpec((bb, H4), lambda b, t: (b, 0)),          # hn_last (resident)
        ),
        compiler_params=pltpu.CompilerParams(
            # batch blocks are independent (megacore on v7x); time is the
            # serial recurrence and MUST stay "arbitrary".
            dimension_semantics=("parallel", "arbitrary"),
            vmem_limit_bytes=vmem_limit),
    )(hn0, drive, w_eff)

    # --- heads on the time-major output (contraction dim 4H already last) ---
    masked_tm = rnn_tm[:S, :B, :].astype(jnp.float32) * m1_mask[None]  # (S,B,4H)
    mean_tm = masked_tm @ params["mean_w"].T + params["mean_b"]
    std_tm = jnp.clip(masked_tm @ params["std_w"].T + params["std_b"], -20.0, 10.0)
    mean_out = jnp.transpose(mean_tm, (1, 0, 2))              # tiny (B, S, A)
    std_out = jnp.transpose(std_tm, (1, 0, 2))

    # Single layout transpose only to honour the module's (B, S, 4H) output.
    rnn_out = jnp.transpose(rnn_tm[:S, :B, :], (1, 0, 2))
    hn_last = hn_last_p[:B][None]                             # (1, B, 4H)
    return mean_out, std_out, rnn_out, hn_last


# ---------------------------------------------------------------------------
# Pure-JAX reference (mirrors the PyTorch forward) for a correctness check.
# ---------------------------------------------------------------------------
def reference_forward(inp, hn, params, hid_dim):
    wrec_t, inp_w, bias, str_mask, m1_mask = build_effective_weights(params, hid_dim)
    hn_next = hn[0]
    hs = []
    for t in range(inp.shape[1]):
        pre = ((1.0 - T_CONST) * hn_next
               + T_CONST * (hn_next @ wrec_t + (inp[:, t, :] @ inp_w) * str_mask)
               + bias)
        hn_next = jnp.maximum(pre, 0.0)
        hs.append(hn_next)
    rnn_out = jnp.stack(hs, axis=1)
    masked = rnn_out * m1_mask[None]
    mean_out = masked @ params["mean_w"].T + params["mean_b"]
    std_out = jnp.clip(masked @ params["std_w"].T + params["std_b"], -20.0, 10.0)
    hn_last = rnn_out[:, -1, :][None]
    return mean_out, std_out, rnn_out, hn_last


if __name__ == "__main__":
    inp_dim, hid_dim, action_dim = 4, 32, 1     # 4*hid_dim = 128 (one lane tile)
    batch, seq = 2, 10

    key = jax.random.PRNGKey(0)
    k_params, k_inp, k_hn = jax.random.split(key, 3)

    params = init_params(k_params, inp_dim, hid_dim, action_dim)
    inp = jax.random.uniform(k_inp, (batch, seq, inp_dim), jnp.float32)
    hn = jax.random.uniform(k_hn, (1, batch, 4 * hid_dim), jnp.float32, 0.0, 0.1)

    ref = reference_forward(inp, hn, params, hid_dim)

    # Exact path: f32 weights + f32 drive; time_chunk=4 does NOT divide seq=10,
    # exercising the ragged last-chunk snapshot path.
    outs = rnn_multiregional_forward(inp, hn, params, hid_dim, time_chunk=4,
                                     weight_dtype=jnp.float32,
                                     drive_dtype=jnp.float32)
    outs = jax.block_until_ready(outs)
    for got, want in zip(outs, ref):
        assert got.shape == want.shape, (got.shape, want.shape)
        assert jnp.allclose(got, want, atol=1e-3, rtol=1e-3), \
            float(jnp.max(jnp.abs(got - want)))

    # Default fast path: bf16 MXU weights + bf16 HBM drive, f32 carry/leak/acc.
    outs_fast = rnn_multiregional_forward(inp, hn, params, hid_dim)
    outs_fast = jax.block_until_ready(outs_fast)
    for got, want in zip(outs_fast, ref):
        assert got.shape == want.shape, (got.shape, want.shape)
        assert jnp.allclose(got, want, atol=5e-2, rtol=5e-2), \
            float(jnp.max(jnp.abs(got - want)))

    print("KERNEL_OK")
</pallas_src>

<mosaic_0001>
module attributes {stable_mosaic.version = 11 : i64} {
  func.func @_rnn_chunk_kernel(%arg0: i32, %arg1: i32, %arg2: memref<8x128xf32, #tpu.memory_space<vmem>>, %arg3: memref<4x8x128xf32, #tpu.memory_space<vmem>>, %arg4: memref<128x128xf32, #tpu.memory_space<vmem>>, %arg5: memref<4x8x128xf32, #tpu.memory_space<vmem>>, %arg6: memref<8x128xf32, #tpu.memory_space<vmem>>) attributes {dimension_semantics = [#tpu.dimension_semantics<parallel>, #tpu.dimension_semantics<arbitrary>], iteration_bounds = array<i64: 1, 3>, scalar_prefetch = 0 : i64, scratch_operands = 0 : i64, tpu.core_type = #tpu.core_type<tc>, window_params = [{transform_indices = @transform_0, window_bounds = array<i64: 8, 128>}, {transform_indices = @transform_1, window_bounds = array<i64: 4, 8, 128>}, {pipeline_mode = #tpu.pipeline_mode<synchronous>, transform_indices = @transform_2, window_bounds = array<i64: 128, 128>}, {transform_indices = @transform_3, window_bounds = array<i64: 4, 8, 128>}, {transform_indices = @transform_4, window_bounds = array<i64: 8, 128>}]} {
    %c0_i32 = arith.constant 0 : i32
    %0 = arith.cmpi eq, %arg1, %c0_i32 : i32
    %1 = arith.extui %0 : i1 to i32
    %c0_i32_0 = arith.constant 0 : i32
    %2 = arith.cmpi ne, %1, %c0_i32_0 : i32
    scf.if %2 {
      %c0_45 = arith.constant 0 : index
      %c0_46 = arith.constant 0 : index
      %84 = vector.load %arg2[%c0_45, %c0_46] : memref<8x128xf32, #tpu.memory_space<vmem>>, vector<8x128xf32>
      %c0_47 = arith.constant 0 : index
      %c0_48 = arith.constant 0 : index
      %85 = vector.load %arg6[%c0_47, %c0_48] : memref<8x128xf32, #tpu.memory_space<vmem>>, vector<8x128xf32>
      tpu.vector_store %arg6[%c0_47, %c0_48], %84 {strides = array<i32>} : memref<8x128xf32, #tpu.memory_space<vmem>>, vector<8x128xf32>,
    } else {
    }
    %c0 = arith.constant 0 : index
    %c0_1 = arith.constant 0 : index
    %3 = vector.load %arg4[%c0, %c0_1] : memref<128x128xf32, #tpu.memory_space<vmem>>, vector<128x128xf32>
    %c0_2 = arith.constant 0 : index
    %c0_3 = arith.constant 0 : index
    %4 = vector.load %arg6[%c0_2, %c0_3] : memref<8x128xf32, #tpu.memory_space<vmem>>, vector<8x128xf32>
    %c0_i32_4 = arith.constant 0 : i32
    %cst = arith.constant dense<0.000000e+00> : vector<8x128xf32>
    %5 = tpu.matmul %4, %3, %cst {dimension_numbers = #tpu.dot_dimension_numbers<[1], [0], [0], [1], [0, 0, 1, 1], [], []>} : vector<8x128xf32>, vector<128x128xf32>, vector<8x128xf32> -> vector<8x128xf32>
    %cst_5 = arith.constant 0.899999976 : f32
    %6 = vector.broadcast %cst_5 : f32 to vector<8x128xf32>
    %7 = arith.mulf %6, %4 : vector<8x128xf32>
    %8 = arith.addf %7, %5 : vector<8x128xf32>
    %9 = arith.index_cast %c0_i32_4 : i32 to index
    %c0_6 = arith.constant 0 : index
    %c0_7 = arith.constant 0 : index
    %10 = vector.load %arg3[%9, %c0_6, %c0_7] : memref<4x8x128xf32, #tpu.memory_space<vmem>>, vector<1x8x128xf32>
    %11 = vector.shape_cast %10 : vector<1x8x128xf32> to vector<8x128xf32>
    %12 = arith.addf %8, %11 : vector<8x128xf32>
    %cst_8 = arith.constant 0.000000e+00 : f32
    %13 = vector.broadcast %cst_8 : f32 to vector<8x128xf32>
    %14 = arith.maximumf %12, %13 : vector<8x128xf32>
    %15 = arith.index_cast %c0_i32_4 : i32 to index
    %c0_9 = arith.constant 0 : index
    %c0_10 = arith.constant 0 : index
    %16 = vector.load %arg5[%15, %c0_9, %c0_10] : memref<4x8x128xf32, #tpu.memory_space<vmem>>, vector<1x8x128xf32>
    %17 = vector.shape_cast %16 : vector<1x8x128xf32> to vector<8x128xf32>
    %18 = vector.shape_cast %14 : vector<8x128xf32> to vector<1x8x128xf32>
    tpu.vector_store %arg5[%15, %c0_9, %c0_10], %18 {strides = array<i32>} : memref<4x8x128xf32, #tpu.memory_space<vmem>>, vector<1x8x128xf32>,
    %c4_i32 = arith.constant 4 : i32
    %19 = arith.muli %arg1, %c4_i32 : i32
    %20 = arith.addi %19, %c0_i32_4 : i32
    %c9_i32 = arith.constant 9 : i32
    %21 = arith.cmpi eq, %20, %c9_i32 : i32
    %22 = arith.extui %21 : i1 to i32
    %c0_i32_11 = arith.constant 0 : i32
    %23 = arith.cmpi ne, %22, %c0_i32_11 : i32
    scf.if %23 {
      %c0_45 = arith.constant 0 : index
      %c0_46 = arith.constant 0 : index
      %84 = vector.load %arg6[%c0_45, %c0_46] : memref<8x128xf32, #tpu.memory_space<vmem>>, vector<8x128xf32>
      tpu.vector_store %arg6[%c0_45, %c0_46], %14 {strides = array<i32>} : memref<8x128xf32, #tpu.memory_space<vmem>>, vector<8x128xf32>,
    } else {
    }
    %c1_i32 = arith.constant 1 : i32
    %cst_12 = arith.constant dense<0.000000e+00> : vector<8x128xf32>
    %24 = tpu.matmul %14, %3, %cst_12 {dimension_numbers = #tpu.dot_dimension_numbers<[1], [0], [0], [1], [0, 0, 1, 1], [], []>} : vector<8x128xf32>, vector<128x128xf32>, vector<8x128xf32> -> vector<8x128xf32>
    %cst_13 = arith.constant 0.899999976 : f32
    %25 = vector.broadcast %cst_13 : f32 to vector<8x128xf32>
    %26 = arith.mulf %25, %14 : vector<8x128xf32>
    %27 = arith.addf %26, %24 : vector<8x128xf32>
    %28 = arith.index_cast %c1_i32 : i32 to index
    %c0_14 = arith.constant 0 : index
    %c0_15 = arith.constant 0 : index
    %29 = vector.load %arg3[%28, %c0_14, %c0_15] : memref<4x8x128xf32, #tpu.memory_space<vmem>>, vector<1x8x128xf32>
    %30 = vector.shape_cast %29 : vector<1x8x128xf32> to vector<8x128xf32>
    %31 = arith.addf %27, %30 : vector<8x128xf32>
    %cst_16 = arith.constant 0.000000e+00 : f32
    %32 = vector.broadcast %cst_16 : f32 to vector<8x128xf32>
    %33 = arith.maximumf %31, %32 : vector<8x128xf32>
    %34 = arith.index_cast %c1_i32 : i32 to index
    %c0_17 = arith.constant 0 : index
    %c0_18 = arith.constant 0 : index
    %35 = vector.load %arg5[%34, %c0_17, %c0_18] : memref<4x8x128xf32, #tpu.memory_space<vmem>>, vector<1x8x128xf32>
    %36 = vector.shape_cast %35 : vector<1x8x128xf32> to vector<8x128xf32>
    %37 = vector.shape_cast %33 : vector<8x128xf32> to vector<1x8x128xf32>
    tpu.vector_store %arg5[%34, %c0_17, %c0_18], %37 {strides = array<i32>} : memref<4x8x128xf32, #tpu.memory_space<vmem>>, vector<1x8x128xf32>,
    %c4_i32_19 = arith.constant 4 : i32
    %38 = arith.muli %arg1, %c4_i32_19 : i32
    %39 = arith.addi %38, %c1_i32 : i32
    %c9_i32_20 = arith.constant 9 : i32
    %40 = arith.cmpi eq, %39, %c9_i32_20 : i32
    %41 = arith.extui %40 : i1 to i32
    %c0_i32_21 = arith.constant 0 : i32
    %42 = arith.cmpi ne, %41, %c0_i32_21 : i32
    scf.if %42 {
      %c0_45 = arith.constant 0 : index
      %c0_46 = arith.constant 0 : index
      %84 = vector.load %arg6[%c0_45, %c0_46] : memref<8x128xf32, #tpu.memory_space<vmem>>, vector<8x128xf32>
      tpu.vector_store %arg6[%c0_45, %c0_46], %33 {strides = array<i32>} : memref<8x128xf32, #tpu.memory_space<vmem>>, vector<8x128xf32>,
    } else {
    }
    %c2_i32 = arith.constant 2 : i32
    %cst_22 = arith.constant dense<0.000000e+00> : vector<8x128xf32>
    %43 = tpu.matmul %33, %3, %cst_22 {dimension_numbers = #tpu.dot_dimension_numbers<[1], [0], [0], [1], [0, 0, 1, 1], [], []>} : vector<8x128xf32>, vector<128x128xf32>, vector<8x128xf32> -> vector<8x128xf32>
    %cst_23 = arith.constant 0.899999976 : f32
    %44 = vector.broadcast %cst_23 : f32 to vector<8x128xf32>
    %45 = arith.mulf %44, %33 : vector<8x128xf32>
    %46 = arith.addf %45, %43 : vector<8x128xf32>
    %47 = arith.index_cast %c2_i32 : i32 to index
    %c0_24 = arith.constant 0 : index
    %c0_25 = arith.constant 0 : index
    %48 = vector.load %arg3[%47, %c0_24, %c0_25] : memref<4x8x128xf32, #tpu.memory_space<vmem>>, vector<1x8x128xf32>
    %49 = vector.shape_cast %48 : vector<1x8x128xf32> to vector<8x128xf32>
    %50 = arith.addf %46, %49 : vector<8x128xf32>
    %cst_26 = arith.constant 0.000000e+00 : f32
    %51 = vector.broadcast %cst_26 : f32 to vector<8x128xf32>
    %52 = arith.maximumf %50, %51 : vector<8x128xf32>
    %53 = arith.index_cast %c2_i32 : i32 to index
    %c0_27 = arith.constant 0 : index
    %c0_28 = arith.constant 0 : index
    %54 = vector.load %arg5[%53, %c0_27, %c0_28] : memref<4x8x128xf32, #tpu.memory_space<vmem>>, vector<1x8x128xf32>
    %55 = vector.shape_cast %54 : vector<1x8x128xf32> to vector<8x128xf32>
    %56 = vector.shape_cast %52 : vector<8x128xf32> to vector<1x8x128xf32>
    tpu.vector_store %arg5[%53, %c0_27, %c0_28], %56 {strides = array<i32>} : memref<4x8x128xf32, #tpu.memory_space<vmem>>, vector<1x8x128xf32>,
    %c4_i32_29 = arith.constant 4 : i32
    %57 = arith.muli %arg1, %c4_i32_29 : i32
    %58 = arith.addi %57, %c2_i32 : i32
    %c9_i32_30 = arith.constant 9 : i32
    %59 = arith.cmpi eq, %58, %c9_i32_30 : i32
    %60 = arith.extui %59 : i1 to i32
    %c0_i32_31 = arith.constant 0 : i32
    %61 = arith.cmpi ne, %60, %c0_i32_31 : i32
    scf.if %61 {
      %c0_45 = arith.constant 0 : index
      %c0_46 = arith.constant 0 : index
      %84 = vector.load %arg6[%c0_45, %c0_46] : memref<8x128xf32, #tpu.memory_space<vmem>>, vector<8x128xf32>
      tpu.vector_store %arg6[%c0_45, %c0_46], %52 {strides = array<i32>} : memref<8x128xf32, #tpu.memory_space<vmem>>, vector<8x128xf32>,
    } else {
    }
    %c3_i32 = arith.constant 3 : i32
    %cst_32 = arith.constant dense<0.000000e+00> : vector<8x128xf32>
    %62 = tpu.matmul %52, %3, %cst_32 {dimension_numbers = #tpu.dot_dimension_numbers<[1], [0], [0], [1], [0, 0, 1, 1], [], []>} : vector<8x128xf32>, vector<128x128xf32>, vector<8x128xf32> -> vector<8x128xf32>
    %cst_33 = arith.constant 0.899999976 : f32
    %63 = vector.broadcast %cst_33 : f32 to vector<8x128xf32>
    %64 = arith.mulf %63, %52 : vector<8x128xf32>
    %65 = arith.addf %64, %62 : vector<8x128xf32>
    %66 = arith.index_cast %c3_i32 : i32 to index
    %c0_34 = arith.constant 0 : index
    %c0_35 = arith.constant 0 : index
    %67 = vector.load %arg3[%66, %c0_34, %c0_35] : memref<4x8x128xf32, #tpu.memory_space<vmem>>, vector<1x8x128xf32>
    %68 = vector.shape_cast %67 : vector<1x8x128xf32> to vector<8x128xf32>
    %69 = arith.addf %65, %68 : vector<8x128xf32>
    %cst_36 = arith.constant 0.000000e+00 : f32
    %70 = vector.broadcast %cst_36 : f32 to vector<8x128xf32>
    %71 = arith.maximumf %69, %70 : vector<8x128xf32>
    %72 = arith.index_cast %c3_i32 : i32 to index
    %c0_37 = arith.constant 0 : index
    %c0_38 = arith.constant 0 : index
    %73 = vector.load %arg5[%72, %c0_37, %c0_38] : memref<4x8x128xf32, #tpu.memory_space<vmem>>, vector<1x8x128xf32>
    %74 = vector.shape_cast %73 : vector<1x8x128xf32> to vector<8x128xf32>
    %75 = vector.shape_cast %71 : vector<8x128xf32> to vector<1x8x128xf32>
    tpu.vector_store %arg5[%72, %c0_37, %c0_38], %75 {strides = array<i32>} : memref<4x8x128xf32, #tpu.memory_space<vmem>>, vector<1x8x128xf32>,
    %c4_i32_39 = arith.constant 4 : i32
    %76 = arith.muli %arg1, %c4_i32_39 : i32
    %77 = arith.addi %76, %c3_i32 : i32
    %c9_i32_40 = arith.constant 9 : i32
    %78 = arith.cmpi eq, %77, %c9_i32_40 : i32
    %79 = arith.extui %78 : i1 to i32
    %c0_i32_41 = arith.constant 0 : i32
    %80 = arith.cmpi ne, %79, %c0_i32_41 : i32
    scf.if %80 {
      %c0_45 = arith.constant 0 : index
      %c0_46 = arith.constant 0 : index
      %84 = vector.load %arg6[%c0_45, %c0_46] : memref<8x128xf32, #tpu.memory_space<vmem>>, vector<8x128xf32>
      tpu.vector_store %arg6[%c0_45, %c0_46], %71 {strides = array<i32>} : memref<8x128xf32, #tpu.memory_space<vmem>>, vector<8x128xf32>,
    } else {
    }
    %c4_i32_42 = arith.constant 4 : i32
    %c2_i32_43 = arith.constant 2 : i32
    %81 = arith.cmpi slt, %arg1, %c2_i32_43 : i32
    %82 = arith.extui %81 : i1 to i32
    %c0_i32_44 = arith.constant 0 : i32
    %83 = arith.cmpi ne, %82, %c0_i32_44 : i32
    scf.if %83 {
      %c0_45 = arith.constant 0 : index
      %c0_46 = arith.constant 0 : index
      %84 = vector.load %arg6[%c0_45, %c0_46] : memref<8x128xf32, #tpu.memory_space<vmem>>, vector<8x128xf32>
      tpu.vector_store %arg6[%c0_45, %c0_46], %71 {strides = array<i32>} : memref<8x128xf32, #tpu.memory_space<vmem>>, vector<8x128xf32>,
    } else {
    }
    return
  }
  func.func @transform_0(%arg0: i32, %arg1: i32) -> (i32, i32) {
    %c0_i32 = arith.constant 0 : i32
    %c0_i32_0 = arith.constant 0 : i32
    return %arg0, %c0_i32 : i32, i32
  }
  func.func @transform_1(%arg0: i32, %arg1: i32) -> (i32, i32, i32) {
    %c0_i32 = arith.constant 0 : i32
    %c0_i32_0 = arith.constant 0 : i32
    return %arg1, %arg0, %c0_i32 : i32, i32, i32
  }
  func.func @transform_2(%arg0: i32, %arg1: i32) -> (i32, i32) {
    %c0_i32 = arith.constant 0 : i32
    %c0_i32_0 = arith.constant 0 : i32
    %c0_i32_1 = arith.constant 0 : i32
    return %c0_i32, %c0_i32_0 : i32, i32
  }
  func.func @transform_3(%arg0: i32, %arg1: i32) -> (i32, i32, i32) {
    %c0_i32 = arith.constant 0 : i32
    %c0_i32_0 = arith.constant 0 : i32
    return %arg1, %arg0, %c0_i32 : i32, i32, i32
  }
  func.func @transform_4(%arg0: i32, %arg1: i32) -> (i32, i32) {
    %c0_i32 = arith.constant 0 : i32
    %c0_i32_0 = arith.constant 0 : i32
    return %arg0, %c0_i32 : i32, i32
  }
}

</mosaic_0001>

<bundles_post_ra>
// kernel: rnn_multiregional_forward.1
= control target key start
LH: loop header
LB: loop body
LE: loop exit
PB: predicated region body
PF: predicated region fallthrough
CT: control target
= control target key end

     0   :  { %s1054_s15 = smov 0   ;;  %s1056_s16 = smov 0   ;;  %s1352_s0 = inlined_call_operand.vmem [shape: f32[8,128], index: 0, kind: input, shape index: {}]   ;;  %s1353_s1 = inlined_call_operand.vmem [shape: f32[12,8,128], index: 1, kind: input, shape index: {}]   ;;  %s1354_s2 = inlined_call_operand.vmem [shape: f32[128,128], index: 2, kind: input, shape index: {}]   ;;  %s1355_s3 = inlined_call_operand.vmem [shape: f32[12,8,128], index: 3, kind: output, shape index: {0}]   ;;  %s1356_s4 = inlined_call_operand.vmem [shape: f32[8,128], index: 4, kind: output, shape index: {1}]  }
   0x1   :  { %s1058_s17 = smov 0  }
   0x2 LB: > { %s24_s18 = sadd.s32 1, %s1021_s16  ;;  %p748_p0 = scmp.ge.s32.totalorder %s1025_s17, 1  ;;  %s1025_s17 = sphi %s1058_s17, %s15_s17   ;;  %s1021_s16 = sphi %s1056_s16, %s1358_s16   ;;  %s1017_s15 = sphi %s1054_s15, %s1357_s15  }
   0x3   : > { %p25_p1 = scmp.ge.s32.totalorder %s24_s18, 3  ;;  %p194_p2 = scmp.lt.s32.totalorder %s1025_s17, 4 }
   0x5   : > { %s1360_s18 = smov (%p25_p1, %s24_s18), 0  ;;  %p195_p3 = pnand %p748_p0, %p194_p2 }
   0x6   : > { %s1075_s19 = sshll.u32 (!%p195_p3), %s1017_s15, 2  ;;  %p753_p5 = scmp.ne.s32.totalorder (!%p195_p3), %s1017_s15, 0 }
   0x7   : > { %198 = sbr.rel (%p195_p3) target bundleno = 961 (0x3c1), region = 32  ;;  %p239_p4 = scmp.lt.s32.totalorder (!%p195_p3), %s1075_s19, 11 }
   0xc   : > { %s240_s20 = scalar_select %p239_p4, %s1075_s19, 11 }
   0xd   : > { %263 = sbr.rel (%p753_p5) target bundleno = 20 (0x14), region = 36 }
   0xe   : > { %s750_s21 = sshll.u32 %s240_s20, 3 }
   0xf   : > { %s1082_s24 = scalar_lea.vmem %s1353_s1, %s750_s21  ;;  %s1087_s27 = scalar_lea.vmem %s1355_s3, %s750_s21 }
  0x12   : > { %v264_v0 = vld [vmem:[%s1352_s0] sm:$0xff] }
  0x13   : > { %265 = vst [vmem:[%s1356_s4] sm:$0xff] %v264_v0 }
  0x14 PF: > { %v1099_v1 = vld [vmem:[%s1354_s2 + $0x78] sm:$0xff]  ;;  %v1027_v2 = vmov 0.0   ;;  %v1105_v3 = vld [vmem:[%s1354_s2 + $0x70] sm:$0xff]  ;;  %vm1028_vm0 = vmmov 0   ;;  %v1114_v4 = vld [vmem:[%s1354_s2 + $0x68] sm:$0xff]  ;;  %p755_p6 = scmp.ne.s32.totalorder %s1075_s19, 9 }
  0x15   : > { %837 = vmatprep.subr.mxu0 %v1027_v2  ;;  %869 = vmatprep.mubr.msk.f32.mxu0 %vm1028_vm0, %v1027_v2  ;;  %v1121_v5 = vld [vmem:[%s1354_s2 + $0x60] sm:$0xff]  ;;  %v1128_v6 = vld [vmem:[%s1354_s2 + $0x58] sm:$0xff]  ;;  %v1135_v7 = vld [vmem:[%s1354_s2 + $0x50] sm:$0xff] }
  0x16   : > { %838 = vmatpush3.msra.mxu0 %v1099_v1  ;;  %v1142_v8 = vld [vmem:[%s1354_s2 + $0x48] sm:$0xff]  ;;  %v1149_v9 = vld [vmem:[%s1354_s2 + $0x40] sm:$0xff]  ;;  %v1156_v10 = vld [vmem:[%s1354_s2 + $0x38] sm:$0xff] }
  0x17   : > { %839 = vmatprep.subr.mxu0 %v1027_v2  ;;  %v1163_v11 = vld [vmem:[%s1354_s2 + $0x30] sm:$0xff]  ;;  %v1170_v12 = vld [vmem:[%s1354_s2 + $0x28] sm:$0xff]  ;;  %v1177_v13 = vld [vmem:[%s1354_s2 + $0x20] sm:$0xff] }
  0x18   : > { %840 = vmatpush3.msra.mxu0 %v1105_v3  ;;  %v1184_v14 = vld [vmem:[%s1354_s2 + $0x18] sm:$0xff]  ;;  %v1191_v15 = vld [vmem:[%s1354_s2 + $0x10] sm:$0xff]  ;;  %v1198_v16 = vld [vmem:[%s1354_s2 + $0x8] sm:$0xff] }
  0x19   : > { %841 = vmatprep.subr.mxu0 %v1027_v2  ;;  %v1205_v17 = vld [vmem:[%s1354_s2] sm:$0xff] }
  0x1a   : > { %842 = vmatpush3.msra.mxu0 %v1114_v4  ;;  %v282_v18 = vld [vmem:[%s1356_s4] sm:$0xff] }
  0x1b   : > { %843 = vmatprep.subr.mxu0 %v1027_v2  ;;  %v353_v19 = vmul.f32 0.9, %v282_v18  ;;  %v355_v21 = vld [vmem:[%s1082_s24] sm:$0xff] }
  0x1c   : > { %844 = vmatpush3.msra.mxu0 %v1121_v5 }
  0x1d   : > { %845 = vmatprep.subr.mxu0 %v1027_v2 }
  0x1e   : > { %846 = vmatpush3.msra.mxu0 %v1128_v6 }
  0x1f   : > { %847 = vmatprep.subr.mxu0 %v1027_v2 }
  0x20   : > { %848 = vmatpush3.msra.mxu0 %v1135_v7 }
  0x21   : > { %849 = vmatprep.subr.mxu0 %v1027_v2 }
  0x22   : > { %850 = vmatpush3.msra.mxu0 %v1142_v8 }
  0x23   : > { %851 = vmatprep.subr.mxu0 %v1027_v2 }
  0x24   : > { %852 = vmatpush3.msra.mxu0 %v1149_v9 }
  0x25   : > { %853 = vmatprep.subr.mxu0 %v1027_v2 }
  0x26   : > { %854 = vmatpush3.msra.mxu0 %v1156_v10 }
  0x27   : > { %855 = vmatprep.subr.mxu0 %v1027_v2 }
  0x28   : > { %856 = vmatpush3.msra.mxu0 %v1163_v11 }
  0x29   : > { %857 = vmatprep.subr.mxu0 %v1027_v2 }
  0x2a   : > { %858 = vmatpush3.msra.mxu0 %v1170_v12 }
  0x2b   : > { %859 = vmatprep.subr.mxu0 %v1027_v2 }
  0x2c   : > { %860 = vmatpush3.msra.mxu0 %v1177_v13 }
  0x2d   : > { %861 = vmatprep.subr.mxu0 %v1027_v2 }
  0x2e   : > { %862 = vmatpush3.msra.mxu0 %v1184_v14 }
  0x2f   : > { %863 = vmatprep.subr.mxu0 %v1027_v2 }
  0x30   : > { %864 = vmatpush3.msra.mxu0 %v1191_v15 }
  0x31   : > { %865 = vmatprep.subr.mxu0 %v1027_v2 }
  0x32   : > { %866 = vmatpush3.msra.mxu0 %v1198_v16 }
  0x33   : > { %867 = vmatprep.subr.mxu0 %v1027_v2 }
  0x34   : > { %868 = vmatpush3.msra.mxu0 %v1205_v17 }
  0x35   : > { %870 = vmatmul.mubr.f32.vlgmr.msra.gmra.mxu0 %v282_v18 }
  0xf5   : > { %v349_v20 = vpop.f32.mrf.mxu0 }
  0xf6   : > { %v354_v22 = vadd.f32 %v353_v19, %v349_v20 }
  0xf7   : > { %v871_v23 = vpop.f32.mrf.mxu0 }
  0xf8   : > { %v356_v24 = vadd.f32 %v355_v21, %v354_v22  ;;  %363 = sbr.rel (%p755_p6) target bundleno = 254 (0xfe), region = 40 }
  0xfa   : > { %v357_v25 = vmax.f32 %v356_v24, 0.0 }
  0xfc   : > { %358 = vst [vmem:[%s1087_s27] sm:$0xff] %v357_v25 }
  0xfd   : > { %364 = vst [vmem:[%s1356_s4] sm:$0xff] %v357_v25 }
  0xfe PF: > { %872 = vmatprep.subr.mxu1 %v1027_v2  ;;  %904 = vmatprep.mubr.msk.f32.mxu1 %vm1028_vm0, %v1027_v2  ;;  %s443_s30 = sadd.s32 1, %s1075_s19  ;;  %v435_v26 = vmul.f32 0.9, %v357_v25  ;;  %v756_v28 = vld [vmem:[%s1082_s24 + $0x8] sm:$0xff] }
  0xff   : > { %873 = vmatpush3.msra.mxu1 %v1099_v1  ;;  %p758_p7 = scmp.ne.s32.totalorder %s443_s30, 9 }
 0x100   : > { %874 = vmatprep.subr.mxu1 %v1027_v2 }
 0x101   : > { %875 = vmatpush3.msra.mxu1 %v1105_v3 }
 0x102   : > { %876 = vmatprep.subr.mxu1 %v1027_v2 }
 0x103   : > { %877 = vmatpush3.msra.mxu1 %v1114_v4 }
 0x104   : > { %878 = vmatprep.subr.mxu1 %v1027_v2 }
 0x105   : > { %879 = vmatpush3.msra.mxu1 %v1121_v5 }
 0x106   : > { %880 = vmatprep.subr.mxu1 %v1027_v2 }
 0x107   : > { %881 = vmatpush3.msra.mxu1 %v1128_v6 }
 0x108   : > { %882 = vmatprep.subr.mxu1 %v1027_v2 }
 0x109   : > { %883 = vmatpush3.msra.mxu1 %v1135_v7 }
 0x10a   : > { %884 = vmatprep.subr.mxu1 %v1027_v2 }
 0x10b   : > { %885 = vmatpush3.msra.mxu1 %v1142_v8 }
 0x10c   : > { %886 = vmatprep.subr.mxu1 %v1027_v2 }
 0x10d   : > { %887 = vmatpush3.msra.mxu1 %v1149_v9 }
 0x10e   : > { %888 = vmatprep.subr.mxu1 %v1027_v2 }
 0x10f   : > { %889 = vmatpush3.msra.mxu1 %v1156_v10 }
 0x110   : > { %890 = vmatprep.subr.mxu1 %v1027_v2 }
 0x111   : > { %891 = vmatpush3.msra.mxu1 %v1163_v11 }
 0x112   : > { %892 = vmatprep.subr.mxu1 %v1027_v2 }
 0x113   : > { %893 = vmatpush3.msra.mxu1 %v1170_v12 }
 0x114   : > { %894 = vmatprep.subr.mxu1 %v1027_v2 }
 0x115   : > { %895 = vmatpush3.msra.mxu1 %v1177_v13 }
 0x116   : > { %896 = vmatprep.subr.mxu1 %v1027_v2 }
 0x117   : > { %897 = vmatpush3.msra.mxu1 %v1184_v14 }
 0x118   : > { %898 = vmatprep.subr.mxu1 %v1027_v2 }
 0x119   : > { %899 = vmatpush3.msra.mxu1 %v1191_v15 }
 0x11a   : > { %900 = vmatprep.subr.mxu1 %v1027_v2 }
 0x11b   : > { %901 = vmatpush3.msra.mxu1 %v1198_v16 }
 0x11c   : > { %902 = vmatprep.subr.mxu1 %v1027_v2 }
 0x11d   : > { %903 = vmatpush3.msra.mxu1 %v1205_v17 }
 0x11e   : > { %905 = vmatmul.mubr.f32.vlgmr.msra.gmra.mxu1 %v357_v25 }
 0x1de   : > { %v431_v27 = vpop.f32.mrf.mxu1 }
 0x1df   : > { %v436_v29 = vadd.f32 %v435_v26, %v431_v27 }
 0x1e0   : > { %v906_v30 = vpop.f32.mrf.mxu1 }
 0x1e1   : > { %v439_v31 = vadd.f32 %v756_v28, %v436_v29  ;;  %447 = sbr.rel (%p758_p7) target bundleno = 487 (0x1e7), region = 44 }
 0x1e3   : > { %v440_v32 = vmax.f32 %v439_v31, 0.0 }
 0x1e5   : > { %757 = vst [vmem:[%s1087_s27 + $0x8] sm:$0xff] %v440_v32 }
 0x1e6   : > { %448 = vst [vmem:[%s1356_s4] sm:$0xff] %v440_v32 }
 0x1e7 PF: > { %907 = vmatprep.subr.mxu0 %v1027_v2  ;;  %939 = vmatprep.mubr.msk.f32.mxu0 %vm1028_vm0, %v1027_v2  ;;  %s527_s7 = sadd.s32 2, %s1075_s19  ;;  %v519_v33 = vmul.f32 0.9, %v440_v32  ;;  %v759_v35 = vld [vmem:[%s1082_s24 + $0x10] sm:$0xff] }
 0x1e8   : > { %908 = vmatpush3.msra.mxu0 %v1099_v1  ;;  %p761_p8 = scmp.ne.s32.totalorder %s527_s7, 9 }
 0x1e9   : > { %909 = vmatprep.subr.mxu0 %v1027_v2 }
 0x1ea   : > { %910 = vmatpush3.msra.mxu0 %v1105_v3 }
 0x1eb   : > { %911 = vmatprep.subr.mxu0 %v1027_v2 }
 0x1ec   : > { %912 = vmatpush3.msra.mxu0 %v1114_v4 }
 0x1ed   : > { %913 = vmatprep.subr.mxu0 %v1027_v2 }
 0x1ee   : > { %914 = vmatpush3.msra.mxu0 %v1121_v5 }
 0x1ef   : > { %915 = vmatprep.subr.mxu0 %v1027_v2 }
 0x1f0   : > { %916 = vmatpush3.msra.mxu0 %v1128_v6 }
 0x1f1   : > { %917 = vmatprep.subr.mxu0 %v1027_v2 }
 0x1f2   : > { %918 = vmatpush3.msra.mxu0 %v1135_v7 }
 0x1f3   : > { %919 = vmatprep.subr.mxu0 %v1027_v2 }
 0x1f4   : > { %920 = vmatpush3.msra.mxu0 %v1142_v8 }
 0x1f5   : > { %921 = vmatprep.subr.mxu0 %v1027_v2 }
 0x1f6   : > { %922 = vmatpush3.msra.mxu0 %v1149_v9 }
 0x1f7   : > { %923 = vmatprep.subr.mxu0 %v1027_v2 }
 0x1f8   : > { %924 = vmatpush3.msra.mxu0 %v1156_v10 }
 0x1f9   : > { %925 = vmatprep.subr.mxu0 %v1027_v2 }
 0x1fa   : > { %926 = vmatpush3.msra.mxu0 %v1163_v11 }
 0x1fb   : > { %927 = vmatprep.subr.mxu0 %v1027_v2 }
 0x1fc   : > { %928 = vmatpush3.msra.mxu0 %v1170_v12 }
 0x1fd   : > { %929 = vmatprep.subr.mxu0 %v1027_v2 }
 0x1fe   : > { %930 = vmatpush3.msra.mxu0 %v1177_v13 }
 0x1ff   : > { %931 = vmatprep.subr.mxu0 %v1027_v2 }
 0x200   : > { %932 = vmatpush3.msra.mxu0 %v1184_v14 }
 0x201   : > { %933 = vmatprep.subr.mxu0 %v1027_v2 }
 0x202   : > { %934 = vmatpush3.msra.mxu0 %v1191_v15 }
 0x203   : > { %935 = vmatprep.subr.mxu0 %v1027_v2 }
 0x204   : > { %936 = vmatpush3.msra.mxu0 %v1198_v16 }
 0x205   : > { %937 = vmatprep.subr.mxu0 %v1027_v2 }
 0x206   : > { %938 = vmatpush3.msra.mxu0 %v1205_v17 }
 0x207   : > { %940 = vmatmul.mubr.f32.vlgmr.msra.gmra.mxu0 %v440_v32 }
 0x2c7   : > { %v515_v34 = vpop.f32.mrf.mxu0 }
 0x2c8   : > { %v520_v36 = vadd.f32 %v519_v33, %v515_v34 }
 0x2c9   : > { %v941_v37 = vpop.f32.mrf.mxu0 }
 0x2ca   : > { %v523_v38 = vadd.f32 %v759_v35, %v520_v36  ;;  %531 = sbr.rel (%p761_p8) target bundleno = 720 (0x2d0), region = 48 }
 0x2cc   : > { %v524_v39 = vmax.f32 %v523_v38, 0.0 }
 0x2ce   : > { %760 = vst [vmem:[%s1087_s27 + $0x10] sm:$0xff] %v524_v39 }
 0x2cf   : > { %532 = vst [vmem:[%s1356_s4] sm:$0xff] %v524_v39 }
 0x2d0 PF: > { %942 = vmatprep.subr.mxu1 %v1027_v2  ;;  %974 = vmatprep.mubr.msk.f32.mxu1 %vm1028_vm0, %v1027_v2  ;;  %s611_s10 = sadd.s32 3, %s1075_s19  ;;  %v603_v40 = vmul.f32 0.9, %v524_v39  ;;  %v762_v42 = vld [vmem:[%s1082_s24 + $0x18] sm:$0xff] }
 0x2d1   : > { %943 = vmatpush3.msra.mxu1 %v1099_v1  ;;  %p764_p9 = scmp.ne.s32.totalorder %s611_s10, 9 }
 0x2d2   : > { %944 = vmatprep.subr.mxu1 %v1027_v2 }
 0x2d3   : > { %945 = vmatpush3.msra.mxu1 %v1105_v3 }
 0x2d4   : > { %946 = vmatprep.subr.mxu1 %v1027_v2 }
 0x2d5   : > { %947 = vmatpush3.msra.mxu1 %v1114_v4 }
 0x2d6   : > { %948 = vmatprep.subr.mxu1 %v1027_v2 }
 0x2d7   : > { %949 = vmatpush3.msra.mxu1 %v1121_v5 }
 0x2d8   : > { %950 = vmatprep.subr.mxu1 %v1027_v2 }
 0x2d9   : > { %951 = vmatpush3.msra.mxu1 %v1128_v6 }
 0x2da   : > { %952 = vmatprep.subr.mxu1 %v1027_v2 }
 0x2db   : > { %953 = vmatpush3.msra.mxu1 %v1135_v7 }
 0x2dc   : > { %954 = vmatprep.subr.mxu1 %v1027_v2 }
 0x2dd   : > { %955 = vmatpush3.msra.mxu1 %v1142_v8 }
 0x2de   : > { %956 = vmatprep.subr.mxu1 %v1027_v2 }
 0x2df   : > { %957 = vmatpush3.msra.mxu1 %v1149_v9 }
 0x2e0   : > { %958 = vmatprep.subr.mxu1 %v1027_v2 }
 0x2e1   : > { %959 = vmatpush3.msra.mxu1 %v1156_v10 }
 0x2e2   : > { %960 = vmatprep.subr.mxu1 %v1027_v2 }
 0x2e3   : > { %961 = vmatpush3.msra.mxu1 %v1163_v11 }
 0x2e4   : > { %962 = vmatprep.subr.mxu1 %v1027_v2 }
 0x2e5   : > { %963 = vmatpush3.msra.mxu1 %v1170_v12 }
 0x2e6   : > { %964 = vmatprep.subr.mxu1 %v1027_v2 }
 0x2e7   : > { %965 = vmatpush3.msra.mxu1 %v1177_v13 }
 0x2e8   : > { %966 = vmatprep.subr.mxu1 %v1027_v2 }
 0x2e9   : > { %967 = vmatpush3.msra.mxu1 %v1184_v14 }
 0x2ea   : > { %968 = vmatprep.subr.mxu1 %v1027_v2 }
 0x2eb   : > { %969 = vmatpush3.msra.mxu1 %v1191_v15 }
 0x2ec   : > { %970 = vmatprep.subr.mxu1 %v1027_v2 }
 0x2ed   : > { %971 = vmatpush3.msra.mxu1 %v1198_v16 }
 0x2ee   : > { %972 = vmatprep.subr.mxu1 %v1027_v2 }
 0x2ef   : > { %973 = vmatpush3.msra.mxu1 %v1205_v17 }
 0x2f0   : > { %975 = vmatmul.mubr.f32.vlgmr.msra.gmra.mxu1 %v524_v39 }
 0x3b0   : > { %v599_v41 = vpop.f32.mrf.mxu1 }
 0x3b1   : > { %v604_v43 = vadd.f32 %v603_v40, %v599_v41 }
 0x3b2   : > { %v976_v44 = vpop.f32.mrf.mxu1 }
 0x3b3   : > { %v607_v45 = vadd.f32 %v762_v42, %v604_v43  ;;  %615 = sbr.rel (%p764_p9) target bundleno = 953 (0x3b9), region = 52 }
 0x3b5   : > { %v608_v46 = vmax.f32 %v607_v45, 0.0 }
 0x3b7   : > { %763 = vst [vmem:[%s1087_s27 + $0x18] sm:$0xff] %v608_v46 }
 0x3b8   : > { %616 = vst [vmem:[%s1356_s4] sm:$0xff] %v608_v46 }
 0x3b9 PF: > { %p765_p10 = scmp.ge.s32.totalorder %s1017_s15, 2 }
 0x3bb   : > { %620 = sbr.rel (%p765_p10) target bundleno = 961 (0x3c1), region = 56 }
 0x3c0   : > { %621 = vst [vmem:[%s1356_s4] sm:$0xff] %v608_v46 }
 0x3c1 PF: > { %s15_s17 = sadd.s32 1, %s1025_s17   ;;  %s1357_s15 = smov %s1021_s16 }
 0x3c2   : > { %p12_p11 = scmp.ge.s32.totalorder %s15_s17, 5   ;;  %s1358_s16 = smov %s1360_s18 }
 0x3c4   :  { %14 = sbr.rel (!%p12_p11) target bundleno = 2 (0x2), region = 107 }

</bundles_post_ra>
